<compile_context>
chip_gen: v7x
topology: tpu7x:2x2x1
jax: 0.10.0
libtpu: 0.0.40
codegen_flags: <defaults>
</compile_context>

<pallas_src>
import math

import jax
import jax.numpy as jnp
from jax.experimental import pallas as pl
from jax.experimental.pallas import tpu as pltpu


def _gp_ais_kernel(eps_ref, mu_ref, log_sigma_ref, z_ref, logw_ref):
    # eps: (D, TM) noise tile, mu / log_sigma: (D, 1) broadcast over lanes.
    eps = eps_ref[...]
    mu = mu_ref[...]
    log_sigma = log_sigma_ref[...]

    sigma = jnp.exp(log_sigma)          # (D, 1) EUP op, negligible
    z = mu + sigma * eps                # reparameterized sample from q
    z_ref[...] = z

    # log_w = log p(z) - log q(z)  with p = N(0, I), q = N(mu, diag(sigma^2));
    # the -0.5*log(2*pi) terms cancel exactly:
    #   log_w = sum_d log_sigma_d + 0.5 * (sum_d eps_d^2 - sum_d z_d^2)
    sum_log_sigma = jnp.sum(log_sigma, axis=0, keepdims=True)   # (1, 1)
    se = jnp.sum(eps * eps, axis=0, keepdims=True)              # (1, TM)
    sz = jnp.sum(z * z, axis=0, keepdims=True)                  # (1, TM)
    logw_ref[...] = sum_log_sigma + 0.5 * (se - sz)             # lane-dense


def gp_ais_forward(eps, mu, log_sigma, *, tile_m=8192):
    """eps: (B, N, D), mu: (D,), log_sigma: (D,) -> (z (B,N,D), log_w (B,N))."""
    B, N, D = eps.shape
    M = B * N

    # Particles onto the lane (fast) axis: (D, M).  Layout plumbing only.
    eps_t = eps.reshape(M, D).T
    mu2d = mu.reshape(D, 1)
    ls2d = log_sigma.reshape(D, 1)

    # Pad the particle axis to a tile multiple (lane axis must be a multiple
    # of 128 unless the block covers the full extent).
    if M >= tile_m:
        tm = tile_m
        m_pad = pl.cdiv(M, tm) * tm
    else:
        m_pad = max(128, pl.cdiv(M, 128) * 128)
        tm = m_pad
    if m_pad != M:
        eps_t = jnp.pad(eps_t, ((0, 0), (0, m_pad - M)))

    grid = (m_pad // tm,)

    z_t, logw = pl.pallas_call(
        _gp_ais_kernel,
        out_shape=(
            jax.ShapeDtypeStruct((D, m_pad), eps.dtype),
            jax.ShapeDtypeStruct((1, m_pad), jnp.float32),
        ),
        grid=grid,
        in_specs=[
            pl.BlockSpec((D, tm), lambda i: (0, i)),
            pl.BlockSpec((D, 1), lambda i: (0, 0)),
            pl.BlockSpec((D, 1), lambda i: (0, 0)),
        ],
        out_specs=(
            pl.BlockSpec((D, tm), lambda i: (0, i)),
            pl.BlockSpec((1, tm), lambda i: (0, i)),
        ),
        compiler_params=pltpu.CompilerParams(
            dimension_semantics=("parallel",)),
    )(eps_t, mu2d, ls2d)

    z = z_t[:, :M].T.reshape(B, N, D)
    log_w = logw[0, :M].reshape(B, N)
    return z, log_w


if __name__ == "__main__":
    # Small shapes implied by the module: batch_size B, n_particles N, zdim D.
    B, N, D = 2, 8, 32

    key = jax.random.PRNGKey(0)
    k_eps, k_mu, k_ls = jax.random.split(key, 3)

    # Deterministic "variational parameters" of q (mean / log-std per dim).
    mu = 0.1 * jax.random.normal(k_mu, (D,), dtype=jnp.float32)
    log_sigma = 0.05 * jax.random.normal(k_ls, (D,), dtype=jnp.float32)

    # Base noise for reparameterized sampling (z = mu + sigma * eps).
    eps = jax.random.normal(k_eps, (B, N, D), dtype=jnp.float32)

    z, log_w = gp_ais_forward(eps, mu, log_sigma)
    jax.block_until_ready((z, log_w))

    # Reference check in plain JAX (un-simplified form, incl. 2*pi terms).
    half_log_2pi = 0.5 * math.log(2.0 * math.pi)
    sigma = jnp.exp(log_sigma)
    z_ref = mu + sigma * eps
    log_q_ref = jnp.sum(-half_log_2pi - log_sigma - 0.5 * eps * eps, axis=-1)
    log_p_ref = jnp.sum(-half_log_2pi - 0.5 * z_ref * z_ref, axis=-1)
    assert jnp.allclose(z, z_ref, atol=1e-5)
    assert jnp.allclose(log_w, log_p_ref - log_q_ref, atol=1e-4)

    print("KERNEL_OK")
</pallas_src>

<mosaic_0001>
module attributes {stable_mosaic.version = 11 : i64} {
  func.func @_gp_ais_kernel(%arg0: i32, %arg1: memref<32x128xf32, #tpu.memory_space<vmem>>, %arg2: memref<32x1xf32, #tpu.memory_space<vmem>>, %arg3: memref<32x1xf32, #tpu.memory_space<vmem>>, %arg4: memref<32x128xf32, #tpu.memory_space<vmem>>, %arg5: memref<1x128xf32, #tpu.memory_space<vmem>>) attributes {dimension_semantics = [#tpu.dimension_semantics<parallel>], iteration_bounds = array<i64: 1>, scalar_prefetch = 0 : i64, scratch_operands = 0 : i64, tpu.core_type = #tpu.core_type<tc>, window_params = [{transform_indices = @transform_0, window_bounds = array<i64: 32, 128>}, {pipeline_mode = #tpu.pipeline_mode<synchronous>, transform_indices = @transform_1, window_bounds = array<i64: 32, 1>}, {pipeline_mode = #tpu.pipeline_mode<synchronous>, transform_indices = @transform_2, window_bounds = array<i64: 32, 1>}, {transform_indices = @transform_3, window_bounds = array<i64: 32, 128>}, {transform_indices = @transform_4, window_bounds = array<i64: 1, 128>}]} {
    %c0 = arith.constant 0 : index
    %c0_0 = arith.constant 0 : index
    %0 = vector.load %arg1[%c0, %c0_0] : memref<32x128xf32, #tpu.memory_space<vmem>>, vector<32x128xf32>
    %c0_1 = arith.constant 0 : index
    %c0_2 = arith.constant 0 : index
    %1 = vector.load %arg2[%c0_1, %c0_2] : memref<32x1xf32, #tpu.memory_space<vmem>>, vector<32x1xf32>
    %c0_3 = arith.constant 0 : index
    %c0_4 = arith.constant 0 : index
    %2 = vector.load %arg3[%c0_3, %c0_4] : memref<32x1xf32, #tpu.memory_space<vmem>>, vector<32x1xf32>
    %3 = math.exp %2 : vector<32x1xf32>
    %4 = vector.broadcast %3 : vector<32x1xf32> to vector<32x128xf32>
    %5 = arith.mulf %4, %0 : vector<32x128xf32>
    %6 = vector.broadcast %1 : vector<32x1xf32> to vector<32x128xf32>
    %7 = arith.addf %6, %5 : vector<32x128xf32>
    %c0_5 = arith.constant 0 : index
    %c0_6 = arith.constant 0 : index
    %8 = vector.load %arg4[%c0_5, %c0_6] : memref<32x128xf32, #tpu.memory_space<vmem>>, vector<32x128xf32>
    tpu.vector_store %arg4[%c0_5, %c0_6], %7 {strides = array<i32>} : memref<32x128xf32, #tpu.memory_space<vmem>>, vector<32x128xf32>,
    %cst = arith.constant dense<0.000000e+00> : vector<1xf32>
    %9 = vector.multi_reduction <add>, %2, %cst [0] : vector<32x1xf32> to vector<1xf32>
    %10 = vector.shape_cast %9 : vector<1xf32> to vector<1x1xf32>
    %11 = arith.mulf %0, %0 : vector<32x128xf32>
    %cst_7 = arith.constant dense<0.000000e+00> : vector<128xf32>
    %12 = vector.multi_reduction <add>, %11, %cst_7 [0] : vector<32x128xf32> to vector<128xf32>
    %13 = vector.shape_cast %12 : vector<128xf32> to vector<1x128xf32>
    %14 = arith.mulf %7, %7 : vector<32x128xf32>
    %cst_8 = arith.constant dense<0.000000e+00> : vector<128xf32>
    %15 = vector.multi_reduction <add>, %14, %cst_8 [0] : vector<32x128xf32> to vector<128xf32>
    %16 = vector.shape_cast %15 : vector<128xf32> to vector<1x128xf32>
    %17 = arith.subf %13, %16 : vector<1x128xf32>
    %cst_9 = arith.constant 5.000000e-01 : f32
    %18 = vector.broadcast %cst_9 : f32 to vector<1x128xf32>
    %19 = arith.mulf %18, %17 : vector<1x128xf32>
    %20 = vector.broadcast %10 : vector<1x1xf32> to vector<1x128xf32>
    %21 = arith.addf %20, %19 : vector<1x128xf32>
    %c0_10 = arith.constant 0 : index
    %c0_11 = arith.constant 0 : index
    %22 = vector.load %arg5[%c0_10, %c0_11] : memref<1x128xf32, #tpu.memory_space<vmem>>, vector<1x128xf32>
    tpu.vector_store %arg5[%c0_10, %c0_11], %21 {strides = array<i32>} : memref<1x128xf32, #tpu.memory_space<vmem>>, vector<1x128xf32>,
    return
  }
  func.func @transform_0(%arg0: i32) -> (i32, i32) {
    %c0_i32 = arith.constant 0 : i32
    %c0_i32_0 = arith.constant 0 : i32
    return %c0_i32, %arg0 : i32, i32
  }
  func.func @transform_1(%arg0: i32) -> (i32, i32) {
    %c0_i32 = arith.constant 0 : i32
    %c0_i32_0 = arith.constant 0 : i32
    %c0_i32_1 = arith.constant 0 : i32
    return %c0_i32, %c0_i32_0 : i32, i32
  }
  func.func @transform_2(%arg0: i32) -> (i32, i32) {
    %c0_i32 = arith.constant 0 : i32
    %c0_i32_0 = arith.constant 0 : i32
    %c0_i32_1 = arith.constant 0 : i32
    return %c0_i32, %c0_i32_0 : i32, i32
  }
  func.func @transform_3(%arg0: i32) -> (i32, i32) {
    %c0_i32 = arith.constant 0 : i32
    %c0_i32_0 = arith.constant 0 : i32
    return %c0_i32, %arg0 : i32, i32
  }
  func.func @transform_4(%arg0: i32) -> (i32, i32) {
    %c0_i32 = arith.constant 0 : i32
    %c0_i32_0 = arith.constant 0 : i32
    return %c0_i32, %arg0 : i32, i32
  }
}

</mosaic_0001>

<bundles_post_ra>
// kernel: tpu_custom_call.1
= control target key start
LH: loop header
LB: loop body
LE: loop exit
PB: predicated region body
PF: predicated region fallthrough
CT: control target
= control target key end

     0   :  { %10 = vsyncpa [#allocation3], 0  ;;  %vm90_vm0 = vcmask 7168   ;;  %v232_v3 = vmov 0   ;;  %s326_s0 = inlined_call_operand.vmem [shape: f32[32,128], index: 0, kind: input, shape index: {}]   ;;  %s327_s1 = inlined_call_operand.vmem [shape: f32[32,1], index: 1, kind: input, shape index: {}]   ;;  %s328_s2 = inlined_call_operand.vmem [shape: f32[32,1], index: 2, kind: input, shape index: {}]   ;;  %s329_s3 = inlined_call_operand.hbm [shape: f32[32,128], index: 3, kind: output, shape index: {0}]   ;;  %s330_s4 = inlined_call_operand.hbm [shape: f32[1,128], index: 4, kind: output, shape index: {1}]  }
   0x1   :  { %v23_v0 = vld [vmem:[%s327_s1 + $0x8] sm:$0xff]  ;;  %v22_v1 = vld [vmem:[%s327_s1] sm:$0xff]  ;;  %175 = vset.pattern.permute.xlu0 %v232_v3  ;;  %174 = vset.pattern.permute.xlu1 %v232_v3  ;;  %v28_v5 = vld [vmem:[%s328_s2 + $0x10] sm:$0xff] }
   0x2   :  { %v26_v2 = vld [vmem:[%s328_s2] sm:$0xff]  ;;  %v27_v6 = vld [vmem:[%s328_s2 + $0x8] sm:$0xff]  ;;  %v29_v7 = vld [vmem:[%s328_s2 + $0x18] sm:$0xff]  ;;  %69 = vperm.xlu0 %175, %v23_v0   ;;  %64 = vperm.xlu1 %174, %v22_v1   ;;  %v34_v9 = vmul.f32 1.442695, %v28_v5  ;;  %v94_v13 = vsel %vm90_vm0, %v28_v5, 0.0 }
   0x3   :  { %v30_v4 = vmul.f32 1.442695, %v26_v2  ;;  %v91_v8 = vsel %vm90_vm0, %v26_v2, 0.0  ;;  %v32_v10 = vmul.f32 1.442695, %v27_v6  ;;  %v92_v12 = vsel %vm90_vm0, %v27_v6, 0.0 }
   0x4   :  { %v36_v11 = vmul.f32 1.442695, %v29_v7  ;;  %v93_v14 = vadd.f32 %v92_v12, %v91_v8 }
   0x5   :  { %176 = vpow2.f32 %v30_v4 }
   0x6   :  { %178 = vpow2.f32 %v34_v9 }
   0x7   :  { %11 = vsyncpa [#allocation5], 0  ;;  %180 = vpow2.f32 %v32_v10  ;;  %v96_v15 = vsel %vm90_vm0, %v29_v7, 0.0  ;;  %v95_v16 = vadd.f32 %v94_v13, %v93_v14  ;;  %v24_v27 = vld [vmem:[%s327_s1 + $0x10] sm:$0xff]  ;;  %v25_v28 = vld [vmem:[%s327_s1 + $0x18] sm:$0xff]  ;;  %s233_s11 = smov [#allocation2]  }
   0x8   :  { %182 = vpow2.f32 %v36_v11  ;;  %v18_v30 = vld [vmem:[%s326_s0] sm:$0xff]  ;;  %v19_v31 = vld [vmem:[%s326_s0 + $0x8] sm:$0xff]  ;;  %v20_v34 = vld [vmem:[%s326_s0 + $0x10] sm:$0xff]  ;;  %s144_s12 = sshll.u32 %s233_s11, 4  ;;  %s145_s12 = int_to_ptr.vmem [resolvable:$true] %s144_s12 }
   0x9   :  { %v97_v17 = vadd.f32 %v96_v15, %v95_v16  ;;  %v104_v32 = vmul.f32 %v18_v30, %v18_v30  ;;  %v105_v33 = vmul.f32 %v19_v31, %v19_v31  ;;  %v106_v35 = vmul.f32 %v20_v34, %v20_v34  ;;  %v21_v39 = vld [vmem:[%s326_s0 + $0x18] sm:$0xff]  ;;  %s184_s0 = scalar_lea.vmem %s145_s12, 512  ;;  %p189_p1 = scmp.lt.s32.totalorder %s145_s12, %s145_s12 }
   0xa   :  { %v107_v40 = vmul.f32 %v21_v39, %v21_v39  ;;  %p185_p0 = scmp.ne.s32.totalorder %s145_s12, %s184_s0  ;;  %p190_p2 = scmp.lt.s32.totalorder %s184_s0, %s184_s0 }
   0xb   :  { %v98_v18 = vrot.slane %v97_v17, 4  ;;  %v108_v36 = vadd.f32 %v105_v33, %v104_v32 }
   0xc   :  { %p191_p3 = por %p190_p2, %p189_p1 }
   0xd   :  { %v99_v19 = vadd.f32 %v98_v18, %v97_v17  ;;  %v109_v41 = vadd.f32 %v108_v36, %v106_v35 }
   0xe   :  { %p192_p4 = pnand %p191_p3, %p185_p0 }
   0xf   :  { %v177_v20 = vpop.eup %176  ;;  %v100_v22 = vrot.slane %v99_v19, 2  ;;  %v110_v45 = vadd.f32 %v109_v41, %v107_v40 }
  0x10   :  { %v179_v21 = vpop.eup %178  ;;  %40 = vperm.xlu0 %175, %v177_v20  }
  0x11   :  { %v181_v23 = vpop.eup %180  ;;  %50 = vperm.xlu1 %174, %v179_v21   ;;  %v101_v25 = vadd.f32 %v100_v22, %v99_v19  ;;  %v111_v50 = vrot.slane %v110_v45, 4 }
  0x12   :  { %v183_v24 = vpop.eup %182 }
  0x13   :  { %v102_v26 = vrot.slane %v101_v25, 1  ;;  %v112_v57 = vadd.f32 %v111_v50, %v110_v45 }
  0x14   :  { %45 = vperm.xlu0 %175, %v181_v23  }
  0x15   :  { %55 = vperm.xlu1 %174, %v183_v24   ;;  %v103_v29 = vadd.f32 %v102_v26, %v101_v25  ;;  %v113_v63 = vrot.slane %v112_v57, 2 }
  0x18   :  { %74 = vperm.xlu0 %175, %v24_v27  }
  0x19   :  { %79 = vperm.xlu1 %174, %v25_v28  }
  0x1c   :  { %134 = vperm.xlu0 %175, %v103_v29  }
  0x81   :  { %v70_v37 = vpop.permute.xlu0 %69  ;;  %v65_v38 = vpop.permute.xlu1 %64 }
  0x8f   :  { %v41_v42 = vpop.permute.xlu0 %40 }
  0x90   :  { %v58_v43 = vmul.f32 %v41_v42, %v18_v30  ;;  %v51_v44 = vpop.permute.xlu1 %50 }
  0x91   :  { %v60_v51 = vmul.f32 %v51_v44, %v20_v34 }
  0x92   :  { %v82_v46 = vadd.f32 %v65_v38, %v58_v43 }
  0x93   :  { %v46_v47 = vpop.permute.xlu0 %45 }
  0x94   :  { %86 = vst [vmem:[#allocation2] sm:$0xff] %v82_v46  ;;  %v59_v48 = vmul.f32 %v46_v47, %v19_v31  ;;  %v56_v49 = vpop.permute.xlu1 %55  ;;  %v117_v55 = vmul.f32 %v82_v46, %v82_v46 }
  0x95   :  { %v61_v53 = vmul.f32 %v56_v49, %v21_v39 }
  0x96   :  { %v83_v52 = vadd.f32 %v70_v37, %v59_v48 }
  0x97   :  { %v75_v54 = vpop.permute.xlu0 %74 }
  0x98   :  { %87 = vst [vmem:[#allocation2 + $0x8] sm:$0xff] %v83_v52  ;;  %v118_v56 = vmul.f32 %v83_v52, %v83_v52  ;;  %v84_v58 = vadd.f32 %v75_v54, %v60_v51  ;;  %v80_v59 = vpop.permute.xlu1 %79 }
  0x99   :  { %v85_v60 = vadd.f32 %v80_v59, %v61_v53 }
  0x9a   :  { %88 = vst [vmem:[#allocation2 + $0x10] sm:$0xff] %v84_v58  ;;  %v119_v61 = vmul.f32 %v84_v58, %v84_v58  ;;  %v121_v62 = vadd.f32 %v118_v56, %v117_v55 }
  0x9b   :  { %89 = vst [vmem:[#allocation2 + $0x18] sm:$0xff] %v85_v60  ;;  %v120_v1 = vmul.f32 %v85_v60, %v85_v60 }
  0x9c   :  { %v122_v0 = vadd.f32 %v121_v62, %v119_v61 }
  0x9d   :  { %195 = shalt.err (!%p192_p4)
}
  0x9e   :  { %s196_s15 = scalar_lea.hbm %s329_s3, 512 }
  0x9f   :  { %p197_p5 = scmp.ne.s32.totalorder %s329_s3, %s196_s15  ;;  %p200_p6 = scmp.lt.u32.totalorder %s196_s15, %s329_s3 }
  0xa1   :  { %p202_p7 = pnand %p200_p6, %p197_p5 }
  0xa3   :  { %205 = shalt.err (!%p202_p7)
}
  0xa4   :  { %s234_s20 = smov 128   ;;  %s235_s21 = smov 8   ;;  %v123_v2 = vadd.f32 %v122_v0, %v120_v1  ;;  %v114_v4 = vadd.f32 %v113_v63, %v112_v57  ;;  %v135_v14 = vpop.permute.xlu0 %134 }
  0xa5   :  { %150 = dma.vmem_to_hbm [thread:$0]  %s145_s12, 512, %s329_s3, [#allocation3], %s234_s20, %s234_s20, %s235_s21  }
  0xa6   :  { %v124_v3 = vrot.slane %v123_v2, 4  ;;  %v115_v7 = vrot.slane %v114_v4, 1  ;;  %s236_s24 = smov [#allocation4]  }
  0xa7   :  { %s157_s25 = sshll.u32 %s236_s24, 4  ;;  %s158_s25 = int_to_ptr.vmem [resolvable:$true] %s157_s25 }
  0xa8   :  { %v125_v5 = vadd.f32 %v124_v3, %v123_v2  ;;  %v116_v9 = vadd.f32 %v115_v7, %v114_v4  ;;  %s206_s26 = scalar_lea.vmem %s158_s25, 16  ;;  %s210_s3 = scalar_lea.vmem %s158_s25, 32 }
  0xa9   :  { %p207_p8 = scmp.ne.s32.totalorder %s158_s25, %s206_s26  ;;  %p211_p9 = scmp.lt.s32.totalorder %s158_s25, %s158_s25 }
  0xaa   :  { %v126_v6 = vrot.slane %v125_v5, 2  ;;  %p212_p10 = scmp.lt.s32.totalorder %s210_s3, %s206_s26 }
  0xac   :  { %v127_v8 = vadd.f32 %v126_v6, %v125_v5  ;;  %p213_p11 = por %p212_p10, %p211_p9 }
  0xae   :  { %v128_v10 = vrot.slane %v127_v8, 1  ;;  %p214_p12 = pnand %p213_p11, %p207_p8 }
  0xb0   :  { %v129_v11 = vadd.f32 %v128_v10, %v127_v8 }
  0xb2   :  { %v130_v12 = vsub.f32 %v116_v9, %v129_v11 }
  0xb4   :  { %v131_v13 = vmul.f32 0.5, %v130_v12 }
  0xb6   :  { %v137_v15 = vadd.f32 %v135_v14, %v131_v13 }
  0xb8   :  { %138 = vst [vmem:[#allocation4] sm:$0x1] %v137_v15 }
  0xb9   :  { %217 = shalt.err (!%p214_p12)
}
  0xba   :  { %s218_s28 = scalar_lea.hbm %s330_s4, 16 }
  0xbb   :  { %p219_p13 = scmp.ne.s32.totalorder %s330_s4, %s218_s28  ;;  %p222_p0 = scmp.lt.u32.totalorder %s218_s28, %s330_s4 }
  0xbd   :  { %p224_p1 = pnand %p222_p0, %p219_p13 }
  0xbf   :  { %227 = shalt.err (!%p224_p1)
}
  0xc0   :  { %160 = dma.vmem_to_hbm [thread:$0]  %s158_s25, 16, %s330_s4, [#allocation5]  }
  0xc1   :  { %228 = dma.done.wait [#allocation3], 512  }
  0xc2   :  { %229 = vsyncadd [#allocation3], 4294966784 }
  0xc3   :  { %230 = dma.done.wait [#allocation5], 16  }
  0xc4   :  { %231 = vsyncadd [#allocation5], 4294967280 }
  0xc5   :  { %167 = vsyncpa [#allocation3], 1 }
  0xc6   :  { %168 = vsyncpa [#allocation5], 1 }

</bundles_post_ra>
